<compile_context>
chip_gen: v6e
topology: v6e:2x2x1
jax: 0.10.0
libtpu: 0.0.40
codegen_flags: <defaults>
</compile_context>

<pallas_src>
import functools

import jax
import jax.numpy as jnp
import numpy as np
from jax import lax
from jax.experimental import pallas as pl
from jax.experimental.pallas import tpu as pltpu


def _round_up(n, m):
    return ((n + m - 1) // m) * m


# ---------------------------------------------------------------------------
# Pallas kernels
# ---------------------------------------------------------------------------
def proj_kernel(x_ref, w_ref, b_ref, o_ref):
    """Hoisted input projection tile: (tm,K)@(K,N) + (1,N) -> (tm,N), f32 acc."""
    o_ref[...] = (jnp.dot(x_ref[...], w_ref[...],
                          preferred_element_type=jnp.float32) + b_ref[...])


def lstm_layer_kernel(gx_ref, whh_ref, out_ref, h_scr, c_scr, *, seq_len):
    """One direction of one LSTM layer. Grid axis 0 = direction (0 fwd, 1 bwd).

    gx_ref : (T, Bp, 4*Hp) f32   precomputed x@Wih + (b_ih+b_hh), gate-slab layout
    whh_ref: (Hp, 4*Hp)    bf16  recurrent weights, gate-slab layout
    out_ref: (T, Bp, Hp)   f32   hidden state at every time step
    """
    d = pl.program_id(0)
    hp = h_scr.shape[-1]
    h_scr[...] = jnp.zeros_like(h_scr)
    c_scr[...] = jnp.zeros_like(c_scr)

    def step(t, carry):
        # Forward walks t = 0..T-1, backward walks t = T-1..0.  The whole
        # (T, Bp, 4Hp) slab is VMEM-resident, so reversed access is free.
        tt = jnp.where(d == 1, seq_len - 1 - t, t)
        gates = gx_ref[tt] + jnp.dot(
            h_scr[...].astype(whh_ref.dtype), whh_ref[...],
            preferred_element_type=jnp.float32)            # (Bp, 4Hp) f32
        # PyTorch gate order i, f, g, o; each slab is 128-lane aligned.
        i = jax.nn.sigmoid(gates[:, 0 * hp:1 * hp])
        f = jax.nn.sigmoid(gates[:, 1 * hp:2 * hp])
        g = jnp.tanh(gates[:, 2 * hp:3 * hp])
        o = jax.nn.sigmoid(gates[:, 3 * hp:4 * hp])
        c = f * c_scr[...] + i * g
        h = o * jnp.tanh(c)
        c_scr[...] = c
        h_scr[...] = h
        out_ref[tt] = h
        return carry

    lax.fori_loop(0, seq_len, step, 0, unroll=seq_len <= 32)


# ---------------------------------------------------------------------------
# Pallas wrappers
# ---------------------------------------------------------------------------
def _input_projection(x2d, w, b, *, block_m=512):
    """(M,K)bf16 @ (K,N)bf16 + (1,N)f32 -> (M,N)f32, tiled over M."""
    m, k = x2d.shape
    n = w.shape[1]
    tm = min(block_m, _round_up(m, 16))
    mp = _round_up(m, tm)
    if mp != m:
        x2d = jnp.pad(x2d, ((0, mp - m), (0, 0)))
    out = pl.pallas_call(
        proj_kernel,
        out_shape=jax.ShapeDtypeStruct((mp, n), jnp.float32),
        grid_spec=pltpu.PrefetchScalarGridSpec(
            num_scalar_prefetch=0,
            grid=(mp // tm,),
            in_specs=[
                pl.BlockSpec((tm, k), lambda i: (i, 0)),
                pl.BlockSpec((k, n), lambda i: (0, 0)),
                pl.BlockSpec((1, n), lambda i: (0, 0)),
            ],
            out_specs=pl.BlockSpec((tm, n), lambda i: (i, 0)),
        ),
        compiler_params=pltpu.CompilerParams(
            dimension_semantics=("parallel",)),
    )(x2d, w, b)
    return out[:m]


def _lstm_layer(gx, whh, *, seq_len, bp, hp):
    """Both directions of one layer in a single pallas_call (grid over dir)."""
    kernel = functools.partial(lstm_layer_kernel, seq_len=seq_len)
    return pl.pallas_call(
        kernel,
        out_shape=jax.ShapeDtypeStruct((2, seq_len, bp, hp), jnp.float32),
        grid_spec=pltpu.PrefetchScalarGridSpec(
            num_scalar_prefetch=0,
            grid=(2,),                                     # direction axis
            in_specs=[
                pl.BlockSpec((None, seq_len, bp, 4 * hp),
                             lambda d: (d, 0, 0, 0)),
                pl.BlockSpec((None, hp, 4 * hp), lambda d: (d, 0, 0)),
            ],
            out_specs=pl.BlockSpec((None, seq_len, bp, hp),
                                   lambda d: (d, 0, 0, 0)),
            scratch_shapes=[pltpu.VMEM((bp, hp), jnp.float32),
                            pltpu.VMEM((bp, hp), jnp.float32)],
        ),
        compiler_params=pltpu.CompilerParams(
            # directions are independent -> can shard across the 2 TCs on v7x
            dimension_semantics=("parallel",),
            vmem_limit_bytes=32 * 1024 * 1024),
    )(gx, whh)


# ---------------------------------------------------------------------------
# Weight repacking: PyTorch layout -> padded, lane-aligned gate slabs
# ---------------------------------------------------------------------------
def _pack_layer(p_fwd, p_bwd, *, H, Hp, layer0, E):
    """Returns wih (Din_p, 8*Hp) bf16 (fwd|bwd along N), bias (1, 8*Hp) f32,
    whh (2, Hp, 4*Hp) bf16.  Zero padding guarantees padded hidden lanes stay
    exactly 0 through the recurrence, so no masking is needed between layers."""
    din_p = E if layer0 else 2 * Hp

    def one_dir(p):
        wih = jnp.zeros((din_p, 4 * Hp), jnp.float32)
        whh = jnp.zeros((Hp, 4 * Hp), jnp.float32)
        bias = jnp.zeros((4 * Hp,), jnp.float32)
        b = p["b_ih"] + p["b_hh"]
        for g in range(4):                        # PyTorch gate order i, f, g, o
            w_g = p["w_ih"][g * H:(g + 1) * H]    # (H, Din_real)
            if layer0:
                wih = wih.at[:, g * Hp:g * Hp + H].set(w_g.T)
            else:  # input is [fwd(H) | pad | bwd(H) | pad] in the padded layout
                wih = wih.at[0:H, g * Hp:g * Hp + H].set(w_g[:, 0:H].T)
                wih = wih.at[Hp:Hp + H, g * Hp:g * Hp + H].set(w_g[:, H:2 * H].T)
            whh = whh.at[0:H, g * Hp:g * Hp + H].set(
                p["w_hh"][g * H:(g + 1) * H].T)
            bias = bias.at[g * Hp:g * Hp + H].set(b[g * H:(g + 1) * H])
        return wih, whh, bias

    wf, hf, bf = one_dir(p_fwd)
    wb, hb, bb = one_dir(p_bwd)
    wih = jnp.concatenate([wf, wb], axis=1).astype(jnp.bfloat16)   # (Din_p, 8Hp)
    bias = jnp.concatenate([bf, bb], axis=0).reshape(1, 8 * Hp)    # f32
    whh = jnp.stack([hf, hb], axis=0).astype(jnp.bfloat16)         # (2, Hp, 4Hp)
    return wih, bias, whh


# ---------------------------------------------------------------------------
# Forward pass (Pallas)
# ---------------------------------------------------------------------------
def rnn_forward(text, params, *, hidden_dim, n_layers, output_dim):
    """Pallas equivalent of RNN.forward (eval mode)."""
    B, T = text.shape
    H = hidden_dim
    Hp = _round_up(H, 128)
    Bp = _round_up(B, 8)
    E = params["embedding"].shape[1]

    # Embedding gather + time-major + batch pad (glue, XLA).
    x = jnp.take(params["embedding"], text, axis=0)          # (B, T, E)
    x = jnp.transpose(x, (1, 0, 2)).astype(jnp.float32)      # (T, B, E)
    if Bp != B:
        x = jnp.pad(x, ((0, 0), (0, Bp - B), (0, 0)))        # (T, Bp, E)

    for layer in range(n_layers):
        wih, bias, whh = _pack_layer(params["lstm"][(layer, 0)],
                                     params["lstm"][(layer, 1)],
                                     H=H, Hp=Hp, layer0=(layer == 0), E=E)
        din = x.shape[-1]
        # Hoisted input projection for both directions in one big MXU matmul.
        gx2d = _input_projection(x.reshape(T * Bp, din).astype(jnp.bfloat16),
                                 wih, bias)                   # (T*Bp, 8Hp) f32
        gx = gx2d.reshape(T, Bp, 2, 4 * Hp).transpose(2, 0, 1, 3)  # (2,T,Bp,4Hp)
        out = _lstm_layer(gx, whh, seq_len=T, bp=Bp, hp=Hp)        # (2,T,Bp,Hp)
        x = jnp.concatenate([out[0], out[1]], axis=-1)             # (T,Bp,2Hp)
        # TODO(synk): nn.LSTM inter-layer dropout is train-only; eval forward has none.

    # output[:, -1, :] == [h_fwd(T-1) | h_bwd(T-1)]; keep only real rows/lanes.
    last = jnp.concatenate([x[T - 1, :B, :H], x[T - 1, :B, Hp:Hp + H]], axis=-1)
    # Final FC left to XLA: (B,2H)x(2H,out) is tiny & lane-sparse (perf review).
    return last @ params["fc_w"].T + params["fc_b"]


# ---------------------------------------------------------------------------
# Pure-JAX reference (for correctness check)
# ---------------------------------------------------------------------------
def _ref_dir(x_tbd, p, H, reverse):
    T, B, _ = x_tbd.shape
    h = jnp.zeros((B, H), jnp.float32)
    c = jnp.zeros((B, H), jnp.float32)
    out = [None] * T
    ts = range(T - 1, -1, -1) if reverse else range(T)
    for t in ts:
        gates = x_tbd[t] @ p["w_ih"].T + h @ p["w_hh"].T + p["b_ih"] + p["b_hh"]
        i = jax.nn.sigmoid(gates[:, :H])
        f = jax.nn.sigmoid(gates[:, H:2 * H])
        g = jnp.tanh(gates[:, 2 * H:3 * H])
        o = jax.nn.sigmoid(gates[:, 3 * H:])
        c = f * c + i * g
        h = o * jnp.tanh(c)
        out[t] = h
    return jnp.stack(out, axis=0)


def rnn_forward_ref(text, params, *, hidden_dim, n_layers, output_dim):
    x = jnp.take(params["embedding"], text, axis=0)
    x = jnp.transpose(x, (1, 0, 2)).astype(jnp.float32)
    for layer in range(n_layers):
        fwd = _ref_dir(x, params["lstm"][(layer, 0)], hidden_dim, False)
        bwd = _ref_dir(x, params["lstm"][(layer, 1)], hidden_dim, True)
        x = jnp.concatenate([fwd, bwd], axis=-1)
    return x[-1] @ params["fc_w"].T + params["fc_b"]


# ---------------------------------------------------------------------------
# Deterministic parameter init (PyTorch-style shapes / distributions)
# ---------------------------------------------------------------------------
def init_params(key, *, num_embeddings, embedding_dim, pad_idx,
                hidden_dim, n_layers, output_dim):
    keys = iter(jax.random.split(key, 64))
    emb = jax.random.normal(next(keys), (num_embeddings, embedding_dim),
                            jnp.float32)
    emb = emb.at[pad_idx].set(0.0)                    # padding_idx row = 0

    k = 1.0 / np.sqrt(hidden_dim)
    lstm = {}
    for layer in range(n_layers):
        din = embedding_dim if layer == 0 else 2 * hidden_dim
        for d in range(2):                            # 0 = forward, 1 = reverse
            lstm[(layer, d)] = dict(
                w_ih=jax.random.uniform(next(keys), (4 * hidden_dim, din),
                                        jnp.float32, -k, k),
                w_hh=jax.random.uniform(next(keys), (4 * hidden_dim, hidden_dim),
                                        jnp.float32, -k, k),
                b_ih=jax.random.uniform(next(keys), (4 * hidden_dim,),
                                        jnp.float32, -k, k),
                b_hh=jax.random.uniform(next(keys), (4 * hidden_dim,),
                                        jnp.float32, -k, k),
            )

    kf = 1.0 / np.sqrt(2 * hidden_dim)
    fc_w = jax.random.uniform(next(keys), (output_dim, 2 * hidden_dim),
                              jnp.float32, -kf, kf)
    fc_b = jax.random.uniform(next(keys), (output_dim,), jnp.float32, -kf, kf)
    return dict(embedding=emb, lstm=lstm, fc_w=fc_w, fc_b=fc_b)


# ---------------------------------------------------------------------------
if __name__ == "__main__":
    # Small config consistent with the module's constructor.
    num_embeddings, embedding_dim, pad_idx = 50, 32, 0
    hidden_dim, n_layers, dropout, output_dim = 32, 2, 0.0, 4
    B, T = 2, 8

    key = jax.random.PRNGKey(0)
    kp, kt = jax.random.split(key)
    params = init_params(kp, num_embeddings=num_embeddings,
                         embedding_dim=embedding_dim, pad_idx=pad_idx,
                         hidden_dim=hidden_dim, n_layers=n_layers,
                         output_dim=output_dim)
    text = jax.random.randint(kt, (B, T), 0, num_embeddings, jnp.int32)
    text = text.at[0, -2:].set(pad_idx)               # include some padding tokens

    fwd = functools.partial(rnn_forward, hidden_dim=hidden_dim,
                            n_layers=n_layers, output_dim=output_dim)
    pred = jax.block_until_ready(fwd(text, params))
    assert pred.shape == (B, output_dim), pred.shape

    ref = jax.block_until_ready(
        rnn_forward_ref(text, params, hidden_dim=hidden_dim,
                        n_layers=n_layers, output_dim=output_dim))
    np.testing.assert_allclose(np.asarray(pred), np.asarray(ref),
                               rtol=1e-2, atol=1e-2)
    print("KERNEL_OK")
</pallas_src>

<mosaic_0001>
module attributes {stable_mosaic.version = 11 : i64} {
  func.func @proj_kernel(%arg0: i32, %arg1: memref<64x32xbf16, #tpu.memory_space<vmem>>, %arg2: memref<32x1024xbf16, #tpu.memory_space<vmem>>, %arg3: memref<1x1024xf32, #tpu.memory_space<vmem>>, %arg4: memref<64x1024xf32, #tpu.memory_space<vmem>>) attributes {dimension_semantics = [#tpu.dimension_semantics<parallel>], iteration_bounds = array<i64: 1>, scalar_prefetch = 0 : i64, scratch_operands = 0 : i64, tpu.core_type = #tpu.core_type<tc>, window_params = [{transform_indices = @transform_0, window_bounds = array<i64: 64, 32>}, {pipeline_mode = #tpu.pipeline_mode<synchronous>, transform_indices = @transform_1, window_bounds = array<i64: 32, 1024>}, {pipeline_mode = #tpu.pipeline_mode<synchronous>, transform_indices = @transform_2, window_bounds = array<i64: 1, 1024>}, {transform_indices = @transform_3, window_bounds = array<i64: 64, 1024>}]} {
    %c0 = arith.constant 0 : index
    %c0_0 = arith.constant 0 : index
    %0 = vector.load %arg1[%c0, %c0_0] : memref<64x32xbf16, #tpu.memory_space<vmem>>, vector<64x32xbf16>
    %c0_1 = arith.constant 0 : index
    %c0_2 = arith.constant 0 : index
    %1 = vector.load %arg2[%c0_1, %c0_2] : memref<32x1024xbf16, #tpu.memory_space<vmem>>, vector<32x1024xbf16>
    %cst = arith.constant dense<0.000000e+00> : vector<64x1024xf32>
    %2 = tpu.matmul %0, %1, %cst {dimension_numbers = #tpu.dot_dimension_numbers<[1], [0], [0], [1], [0, 0, 1, 1], [], []>} : vector<64x32xbf16>, vector<32x1024xbf16>, vector<64x1024xf32> -> vector<64x1024xf32>
    %c0_3 = arith.constant 0 : index
    %c0_4 = arith.constant 0 : index
    %3 = vector.load %arg3[%c0_3, %c0_4] : memref<1x1024xf32, #tpu.memory_space<vmem>>, vector<1x1024xf32>
    %4 = vector.broadcast %3 : vector<1x1024xf32> to vector<64x1024xf32>
    %5 = arith.addf %2, %4 : vector<64x1024xf32>
    %c0_5 = arith.constant 0 : index
    %c0_6 = arith.constant 0 : index
    %6 = vector.load %arg4[%c0_5, %c0_6] : memref<64x1024xf32, #tpu.memory_space<vmem>>, vector<64x1024xf32>
    tpu.vector_store %arg4[%c0_5, %c0_6], %5 {strides = array<i32>} : memref<64x1024xf32, #tpu.memory_space<vmem>>, vector<64x1024xf32>,
    return
  }
  func.func @transform_0(%arg0: i32) -> (i32, i32) {
    %c0_i32 = arith.constant 0 : i32
    %c0_i32_0 = arith.constant 0 : i32
    return %arg0, %c0_i32 : i32, i32
  }
  func.func @transform_1(%arg0: i32) -> (i32, i32) {
    %c0_i32 = arith.constant 0 : i32
    %c0_i32_0 = arith.constant 0 : i32
    %c0_i32_1 = arith.constant 0 : i32
    return %c0_i32, %c0_i32_0 : i32, i32
  }
  func.func @transform_2(%arg0: i32) -> (i32, i32) {
    %c0_i32 = arith.constant 0 : i32
    %c0_i32_0 = arith.constant 0 : i32
    %c0_i32_1 = arith.constant 0 : i32
    return %c0_i32, %c0_i32_0 : i32, i32
  }
  func.func @transform_3(%arg0: i32) -> (i32, i32) {
    %c0_i32 = arith.constant 0 : i32
    %c0_i32_0 = arith.constant 0 : i32
    return %arg0, %c0_i32 : i32, i32
  }
}

</mosaic_0001>

<bundles_post_ra>
// kernel: tpu_custom_call.1
= control target key start
LH: loop header
LB: loop body
LE: loop exit
PB: predicated region body
PF: predicated region fallthrough
CT: control target
= control target key end

     0   :  { %8 = vsyncpa [#allocation3], 0  ;;  %s853_s0 = inlined_call_operand.vmem [shape: bf16[64,32], index: 0, kind: input, shape index: {}]   ;;  %s854_s1 = inlined_call_operand.hbm [shape: bf16[32,1024], index: 1, kind: input, shape index: {}]   ;;  %s855_s2 = inlined_call_operand.vmem [shape: f32[1,1024], index: 2, kind: input, shape index: {}]   ;;  %s856_s3 = inlined_call_operand.hbm [shape: f32[64,1024], index: 3, kind: output, shape index: {}]  }
   0x1   :  { %9 = vsyncpa [#allocation4], 0  ;;  %s673_s12 = smov [#allocation2]  }
   0x2   :  { %s17_s13 = sshll.u32 %s673_s12, 4  ;;  %s18_s13 = int_to_ptr.vmem [resolvable:$true] %s17_s13 }
   0x3   :  { %s637_s14 = scalar_lea.vmem %s18_s13, 2048  ;;  %p642_p1 = scmp.lt.s32.totalorder %s18_s13, %s18_s13 }
   0x4   :  { %p638_p0 = scmp.ne.s32.totalorder %s18_s13, %s637_s14  ;;  %p643_p2 = scmp.lt.s32.totalorder %s637_s14, %s637_s14 }
   0x6   :  { %p644_p3 = por %p643_p2, %p642_p1 }
   0x8   :  { %p645_p4 = pnand %p644_p3, %p638_p0 }
   0xa   :  { %648 = shalt.err (!%p645_p4)
}
   0xb   :  { %s674_s15 = smov 512   ;;  %s675_s16 = smov 32  }
   0xc   :  { %23 = dma.hbm_to_vmem [thread:$0]  %s854_s1, 2048, %s18_s13, [#allocation3], %s674_s15, %s674_s15, %s675_s16  }
   0xd   :  { %669 = dma.done.wait [#allocation3], 2048  }
   0xe   :  { %670 = vsyncadd [#allocation3], 4294965248  ;;  %v676_v0 = vmov 0   ;;  %v46_v1 = vld [vmem:[#allocation2 + $0x40] sm:$0xff]  ;;  %v47_v3 = vld [vmem:[#allocation2 + $0x48] sm:$0xff]  ;;  %vm196_vm0 = vcmask 261120   ;;  %v56_v37 = vlaneseq }
   0xf   :  { %241 = vmatprep.mubr.bf16.mxu0 %v676_v0  ;;  %314 = vmatprep.mubr.bf16.mxu1 %v676_v0  ;;  %v50_v2 = vld [vmem:[#allocation2 + $0x60] sm:$0xff]  ;;  %v51_v5 = vld [vmem:[#allocation2 + $0x68] sm:$0xff]  ;;  %v48_v15 = vld [vmem:[#allocation2 + $0x50] sm:$0xff] }
  0x10   :  { %v595_v4 = vcombine.high %v46_v1, %v50_v2  ;;  %v594_v6 = vcombine.low %v46_v1, %v50_v2  ;;  %v38_v7 = vld [vmem:[#allocation2] sm:$0xff]  ;;  %v597_v9 = vcombine.high %v47_v3, %v51_v5  ;;  %v596_v10 = vcombine.low %v47_v3, %v51_v5  ;;  %v39_v12 = vld [vmem:[#allocation2 + $0x8] sm:$0xff]  ;;  %v52_v17 = vld [vmem:[#allocation2 + $0x70] sm:$0xff] }
  0x11   :  { %v42_v8 = vld [vmem:[#allocation2 + $0x20] sm:$0xff]  ;;  %v43_v13 = vld [vmem:[#allocation2 + $0x28] sm:$0xff]  ;;  %v49_v18 = vld [vmem:[#allocation2 + $0x58] sm:$0xff]  ;;  %v599_v21 = vcombine.high %v48_v15, %v52_v17  ;;  %v598_v27 = vcombine.low %v48_v15, %v52_v17  ;;  %v747_v38 = vshrl.u32 %v56_v37, 7 }
  0x12   :  { %v587_v11 = vcombine.high %v38_v7, %v42_v8  ;;  %221 = vmatprep.subr.bf16.mxu0 %v595_v4  ;;  %v589_v14 = vcombine.high %v39_v12, %v43_v13  ;;  %294 = vmatprep.subr.bf16.mxu1 %v597_v9  ;;  %v586_v16 = vcombine.low %v38_v7, %v42_v8  ;;  %v53_v19 = vld [vmem:[#allocation2 + $0x78] sm:$0xff]  ;;  %v625_v22 = vld [vmem:[%s853_s0] sm:$0xff]   ;;  %v40_v24 = vld [vmem:[#allocation2 + $0x10] sm:$0xff] }
  0x13   :  { %222 = vmatpush1.bf16.msra.mxu0 %v594_v6  ;;  %295 = vmatpush1.bf16.msra.mxu1 %v596_v10  ;;  %v588_v20 = vcombine.low %v39_v12, %v43_v13  ;;  %v601_v23 = vcombine.high %v49_v18, %v53_v19  ;;  %v44_v25 = vld [vmem:[#allocation2 + $0x30] sm:$0xff]  ;;  %v41_v26 = vld [vmem:[#allocation2 + $0x18] sm:$0xff]  ;;  %v600_v29 = vcombine.low %v49_v18, %v53_v19  ;;  %v626_v34 = vld [vmem:[%s853_s0 + $0x8] sm:$0xff]   ;;  %v58_v39 = vsub.s32 0, %v747_v38 }
  0x14   :  { %223 = vmatprep.subr.bf16.mxu0 %v587_v11  ;;  %296 = vmatprep.subr.bf16.mxu1 %v589_v14  ;;  %v45_v28 = vld [vmem:[#allocation2 + $0x38] sm:$0xff]  ;;  %v591_v30 = vcombine.high %v40_v24, %v44_v25  ;;  %v590_v32 = vcombine.low %v40_v24, %v44_v25  ;;  %v627_v35 = vld [vmem:[%s853_s0 + $0x10] sm:$0xff]   ;;  %v753_v40 = vld [vmem:[%s855_s2] sm:$0xff]  ;;  %v66_v41 = vsub.s32 2, %v747_v38  ;;  %v62_v42 = vsub.s32 1, %v747_v38  ;;  %s677_s2 = smov [#allocation5]  }
  0x15   :  { %v593_v31 = vcombine.high %v41_v26, %v45_v28  ;;  %v592_v33 = vcombine.low %v41_v26, %v45_v28  ;;  %v628_v36 = vld [vmem:[%s853_s0 + $0x18] sm:$0xff]   ;;  %v70_v43 = vsub.s32 3, %v747_v38  ;;  %v759_v44 = vrot.slane %v753_v40, %v58_v39  ;;  %s570_s27 = sshll.u32 %s677_s2, 4  ;;  %s571_s27 = int_to_ptr.vmem [resolvable:$true] %s570_s27 }
  0x16   :  { %v762_v45 = vrot.slane %v753_v40, %v66_v41  ;;  %v765_v46 = vrot.slane %v753_v40, %v62_v42  ;;  %v82_v39 = vsub.s32 6, %v747_v38  ;;  %s649_s28 = scalar_lea.vmem %s571_s27, 8192  ;;  %p654_p6 = scmp.lt.s32.totalorder %s571_s27, %s571_s27 }
  0x17   :  { %224 = vmatpush1.bf16.msra.mxu0 %v586_v16  ;;  %297 = vmatpush1.bf16.msra.mxu1 %v588_v20  ;;  %v768_v48 = vrot.slane %v753_v40, %v70_v43  ;;  %v78_v43 = vsub.s32 5, %v747_v38  ;;  %p650_p5 = scmp.ne.s32.totalorder %s571_s27, %s649_s28  ;;  %p655_p7 = scmp.lt.s32.totalorder %s649_s28, %s649_s28 }
  0x18   :  { %367 = vmatprep.subr.bf16.mxu0 %v599_v21  ;;  %440 = vmatprep.subr.bf16.mxu1 %v601_v23 }
  0x19   :  { %p656_p8 = por %p655_p7, %p654_p6 }
  0x1a   :  { %602 = vmatmul.mubr.msk.bf16.vlgmr.msra.gmra.mxu0 %vm196_vm0, %v625_v22  ;;  %606 = vmatmul.mubr.msk.bf16.vlgmr.msra.gmra.mxu1 %vm196_vm0, %v625_v22 }
  0x1b   :  { %368 = vmatpush1.bf16.msra.mxu0 %v598_v27  ;;  %441 = vmatpush1.bf16.msra.mxu1 %v600_v29  ;;  %p657_p9 = pnand %p656_p8, %p650_p5 }
  0x1c   :  { %251 = vmatprep.mubr.bf16.mxu0 %v676_v0  ;;  %324 = vmatprep.mubr.bf16.mxu1 %v676_v0 }
  0x1d   :  { %369 = vmatprep.subr.bf16.mxu0 %v591_v30  ;;  %442 = vmatprep.subr.bf16.mxu1 %v593_v31 }
  0x1f   :  { %370 = vmatpush1.bf16.msra.mxu0 %v590_v32  ;;  %443 = vmatpush1.bf16.msra.mxu1 %v592_v33 }
  0x22   :  { %603 = vmatmul.mubr.msk.bf16.gmra.mxu0 %vm196_vm0, %v626_v34  ;;  %607 = vmatmul.mubr.msk.bf16.gmra.mxu1 %vm196_vm0, %v626_v34 }
  0x23   :  { %261 = vmatprep.mubr.bf16.mxu0 %v676_v0  ;;  %334 = vmatprep.mubr.bf16.mxu1 %v676_v0 }
  0x2a   :  { %604 = vmatmul.mubr.msk.bf16.gmra.mxu0 %vm196_vm0, %v627_v35  ;;  %608 = vmatmul.mubr.msk.bf16.gmra.mxu1 %vm196_vm0, %v627_v35 }
  0x2b   :  { %271 = vmatprep.mubr.bf16.mxu0 %v676_v0  ;;  %344 = vmatprep.mubr.bf16.mxu1 %v676_v0 }
  0x32   :  { %605 = vmatmul.mubr.msk.bf16.gmra.mxu0 %vm196_vm0, %v628_v36  ;;  %609 = vmatmul.mubr.msk.bf16.gmra.mxu1 %vm196_vm0, %v628_v36 }
  0x33   :  { %387 = vmatprep.mubr.bf16.mxu0 %v676_v0  ;;  %460 = vmatprep.mubr.bf16.mxu1 %v676_v0 }
  0x3a   :  { %610 = vmatmul.mubr.msk.bf16.vlgmr.msra.gmra.mxu0 %vm196_vm0, %v625_v22  ;;  %614 = vmatmul.mubr.msk.bf16.vlgmr.msra.gmra.mxu1 %vm196_vm0, %v625_v22 }
  0x3b   :  { %397 = vmatprep.mubr.bf16.mxu0 %v676_v0  ;;  %470 = vmatprep.mubr.bf16.mxu1 %v676_v0 }
  0x42   :  { %611 = vmatmul.mubr.msk.bf16.gmra.mxu0 %vm196_vm0, %v626_v34  ;;  %615 = vmatmul.mubr.msk.bf16.gmra.mxu1 %vm196_vm0, %v626_v34 }
  0x43   :  { %407 = vmatprep.mubr.bf16.mxu0 %v676_v0  ;;  %480 = vmatprep.mubr.bf16.mxu1 %v676_v0 }
  0x4a   :  { %612 = vmatmul.mubr.msk.bf16.gmra.mxu0 %vm196_vm0, %v627_v35  ;;  %616 = vmatmul.mubr.msk.bf16.gmra.mxu1 %vm196_vm0, %v627_v35  ;;  %v74_v35 = vsub.s32 4, %v747_v38 }
  0x4b   :  { %417 = vmatprep.mubr.bf16.mxu0 %v676_v0  ;;  %490 = vmatprep.mubr.bf16.mxu1 %v676_v0 }
  0x52   :  { %613 = vmatmul.mubr.msk.bf16.gmra.mxu0 %vm196_vm0, %v628_v36  ;;  %617 = vmatmul.mubr.msk.bf16.gmra.mxu1 %vm196_vm0, %v628_v36 }
  0xda   :  { %v243_v47 = vpop.f32.mrf.mxu0  ;;  %v316_v50 = vpop.f32.mrf.mxu1 }
  0xdb   :  { %v244_v49 = vadd.f32 %v243_v47, %v759_v44  ;;  %v317_v51 = vadd.f32 %v316_v50, %v762_v45  ;;  %v86_v50 = vsub.s32 7, %v747_v38  ;;  %v812_v38 = vrot.slane %v753_v40, %v78_v43 }
  0xdc   :  { %v245_v52 = vpop.f32.mrf.mxu0  ;;  %v318_v54 = vpop.f32.mrf.mxu1 }
  0xdd   :  { %501 = vst [vmem:[#allocation5] sm:$0xff] %v244_v49  ;;  %v246_v53 = vadd.f32 %v245_v52, %v765_v46  ;;  %503 = vst [vmem:[#allocation5 + $0x10] sm:$0xff] %v317_v51  ;;  %v319_v55 = vadd.f32 %v318_v54, %v768_v48 }
  0xde   :  { %v247_v56 = vpop.f32.mrf.mxu0  ;;  %v320_v58 = vpop.f32.mrf.mxu1 }
  0xdf   :  { %502 = vst [vmem:[#allocation5 + $0x8] sm:$0xff] %v246_v53  ;;  %v248_v57 = vadd.f32 %v247_v56, %v759_v44  ;;  %504 = vst [vmem:[#allocation5 + $0x18] sm:$0xff] %v319_v55  ;;  %v321_v59 = vadd.f32 %v320_v58, %v762_v45  ;;  %v804_v53 = vrot.slane %v753_v40, %v74_v35 }
  0xe0   :  { %v249_v60 = vpop.f32.mrf.mxu0  ;;  %v322_v62 = vpop.f32.mrf.mxu1  ;;  %v808_v56 = vrot.slane %v753_v40, %v82_v39 }
  0xe1   :  { %509 = vst [vmem:[#allocation5 + $0x40] sm:$0xff] %v248_v57  ;;  %v250_v61 = vadd.f32 %v249_v60, %v765_v46  ;;  %511 = vst [vmem:[#allocation5 + $0x50] sm:$0xff] %v321_v59  ;;  %v323_v63 = vadd.f32 %v322_v62, %v768_v48  ;;  %v816_v60 = vrot.slane %v753_v40, %v86_v50 }
  0xe2   :  { %v253_v0 = vpop.f32.mrf.mxu0  ;;  %v326_v2 = vpop.f32.mrf.mxu1 }
  0xe3   :  { %510 = vst [vmem:[#allocation5 + $0x48] sm:$0xff] %v250_v61  ;;  %v254_v1 = vadd.f32 %v253_v0, %v759_v44  ;;  %512 = vst [vmem:[#allocation5 + $0x58] sm:$0xff] %v323_v63  ;;  %v327_v3 = vadd.f32 %v326_v2, %v762_v45 }
  0xe4   :  { %v255_v4 = vpop.f32.mrf.mxu0  ;;  %v328_v6 = vpop.f32.mrf.mxu1 }
  0xe5   :  { %517 = vst [vmem:[#allocation5 + $0x80] sm:$0xff] %v254_v1  ;;  %v256_v5 = vadd.f32 %v255_v4, %v765_v46  ;;  %519 = vst [vmem:[#allocation5 + $0x90] sm:$0xff] %v327_v3  ;;  %v329_v7 = vadd.f32 %v328_v6, %v768_v48 }
  0xe6   :  { %v257_v8 = vpop.f32.mrf.mxu0  ;;  %v330_v10 = vpop.f32.mrf.mxu1 }
  0xe7   :  { %518 = vst [vmem:[#allocation5 + $0x88] sm:$0xff] %v256_v5  ;;  %v258_v9 = vadd.f32 %v257_v8, %v759_v44  ;;  %520 = vst [vmem:[#allocation5 + $0x98] sm:$0xff] %v329_v7  ;;  %v331_v11 = vadd.f32 %v330_v10, %v762_v45 }
  0xe8   :  { %v259_v12 = vpop.f32.mrf.mxu0  ;;  %v332_v14 = vpop.f32.mrf.mxu1 }
  0xe9   :  { %525 = vst [vmem:[#allocation5 + $0xc0] sm:$0xff] %v258_v9  ;;  %v260_v13 = vadd.f32 %v259_v12, %v765_v46  ;;  %527 = vst [vmem:[#allocation5 + $0xd0] sm:$0xff] %v331_v11  ;;  %v333_v15 = vadd.f32 %v332_v14, %v768_v48 }
  0xea   :  { %v263_v16 = vpop.f32.mrf.mxu0  ;;  %v336_v18 = vpop.f32.mrf.mxu1 }
  0xeb   :  { %526 = vst [vmem:[#allocation5 + $0xc8] sm:$0xff] %v260_v13  ;;  %v264_v17 = vadd.f32 %v263_v16, %v759_v44  ;;  %528 = vst [vmem:[#allocation5 + $0xd8] sm:$0xff] %v333_v15  ;;  %v337_v19 = vadd.f32 %v336_v18, %v762_v45 }
  0xec   :  { %v265_v20 = vpop.f32.mrf.mxu0  ;;  %v338_v22 = vpop.f32.mrf.mxu1 }
  0xed   :  { %533 = vst [vmem:[#allocation5 + $0x100] sm:$0xff] %v264_v17  ;;  %v266_v21 = vadd.f32 %v265_v20, %v765_v46  ;;  %535 = vst [vmem:[#allocation5 + $0x110] sm:$0xff] %v337_v19  ;;  %v339_v23 = vadd.f32 %v338_v22, %v768_v48 }
  0xee   :  { %v267_v24 = vpop.f32.mrf.mxu0  ;;  %v340_v26 = vpop.f32.mrf.mxu1 }
  0xef   :  { %534 = vst [vmem:[#allocation5 + $0x108] sm:$0xff] %v266_v21  ;;  %v268_v25 = vadd.f32 %v267_v24, %v759_v44  ;;  %536 = vst [vmem:[#allocation5 + $0x118] sm:$0xff] %v339_v23  ;;  %v341_v27 = vadd.f32 %v340_v26, %v762_v45 }
  0xf0   :  { %v269_v28 = vpop.f32.mrf.mxu0  ;;  %v342_v30 = vpop.f32.mrf.mxu1 }
  0xf1   :  { %541 = vst [vmem:[#allocation5 + $0x140] sm:$0xff] %v268_v25  ;;  %v270_v29 = vadd.f32 %v269_v28, %v765_v46  ;;  %543 = vst [vmem:[#allocation5 + $0x150] sm:$0xff] %v341_v27  ;;  %v343_v31 = vadd.f32 %v342_v30, %v768_v48 }
  0xf2   :  { %v273_v32 = vpop.f32.mrf.mxu0  ;;  %v346_v34 = vpop.f32.mrf.mxu1 }
  0xf3   :  { %542 = vst [vmem:[#allocation5 + $0x148] sm:$0xff] %v270_v29  ;;  %v274_v33 = vadd.f32 %v273_v32, %v759_v44  ;;  %544 = vst [vmem:[#allocation5 + $0x158] sm:$0xff] %v343_v31  ;;  %v347_v36 = vadd.f32 %v346_v34, %v762_v45 }
  0xf4   :  { %v275_v37 = vpop.f32.mrf.mxu0  ;;  %v348_v42 = vpop.f32.mrf.mxu1 }
  0xf5   :  { %549 = vst [vmem:[#allocation5 + $0x180] sm:$0xff] %v274_v33  ;;  %v276_v41 = vadd.f32 %v275_v37, %v765_v46  ;;  %551 = vst [vmem:[#allocation5 + $0x190] sm:$0xff] %v347_v36  ;;  %v349_v47 = vadd.f32 %v348_v42, %v768_v48 }
  0xf6   :  { %v277_v49 = vpop.f32.mrf.mxu0  ;;  %v350_v52 = vpop.f32.mrf.mxu1 }
  0xf7   :  { %550 = vst [vmem:[#allocation5 + $0x188] sm:$0xff] %v276_v41  ;;  %v278_v51 = vadd.f32 %v277_v49, %v759_v44  ;;  %552 = vst [vmem:[#allocation5 + $0x198] sm:$0xff] %v349_v47  ;;  %v351_v54 = vadd.f32 %v350_v52, %v762_v45 }
  0xf8   :  { %v279_v55 = vpop.f32.mrf.mxu0  ;;  %v352_v58 = vpop.f32.mrf.mxu1 }
  0xf9   :  { %557 = vst [vmem:[#allocation5 + $0x1c0] sm:$0xff] %v278_v51  ;;  %v280_v57 = vadd.f32 %v279_v55, %v765_v46  ;;  %559 = vst [vmem:[#allocation5 + $0x1d0] sm:$0xff] %v351_v54  ;;  %v353_v44 = vadd.f32 %v352_v58, %v768_v48 }
  0xfa   :  { %v389_v59 = vpop.f32.mrf.mxu0  ;;  %v462_v61 = vpop.f32.mrf.mxu1 }
  0xfb   :  { %558 = vst [vmem:[#allocation5 + $0x1c8] sm:$0xff] %v280_v57  ;;  %v390_v45 = vadd.f32 %v389_v59, %v804_v53  ;;  %560 = vst [vmem:[#allocation5 + $0x1d8] sm:$0xff] %v353_v44  ;;  %v463_v62 = vadd.f32 %v462_v61, %v808_v56 }
  0xfc   :  { %v391_v63 = vpop.f32.mrf.mxu0  ;;  %v464_v0 = vpop.f32.mrf.mxu1 }
  0xfd   :  { %505 = vst [vmem:[#allocation5 + $0x20] sm:$0xff] %v390_v45  ;;  %v392_v46 = vadd.f32 %v391_v63, %v812_v38  ;;  %507 = vst [vmem:[#allocation5 + $0x30] sm:$0xff] %v463_v62  ;;  %v465_v1 = vadd.f32 %v464_v0, %v816_v60 }
  0xfe   :  { %v393_v48 = vpop.f32.mrf.mxu0  ;;  %v466_v2 = vpop.f32.mrf.mxu1 }
  0xff   :  { %506 = vst [vmem:[#allocation5 + $0x28] sm:$0xff] %v392_v46  ;;  %v394_v40 = vadd.f32 %v393_v48, %v804_v53  ;;  %508 = vst [vmem:[#allocation5 + $0x38] sm:$0xff] %v465_v1  ;;  %v467_v3 = vadd.f32 %v466_v2, %v808_v56 }
 0x100   :  { %v395_v4 = vpop.f32.mrf.mxu0  ;;  %v468_v6 = vpop.f32.mrf.mxu1 }
 0x101   :  { %513 = vst [vmem:[#allocation5 + $0x60] sm:$0xff] %v394_v40  ;;  %v396_v5 = vadd.f32 %v395_v4, %v812_v38  ;;  %515 = vst [vmem:[#allocation5 + $0x70] sm:$0xff] %v467_v3  ;;  %v469_v7 = vadd.f32 %v468_v6, %v816_v60 }
 0x102   :  { %v399_v8 = vpop.f32.mrf.mxu0  ;;  %v472_v10 = vpop.f32.mrf.mxu1 }
 0x103   :  { %514 = vst [vmem:[#allocation5 + $0x68] sm:$0xff] %v396_v5  ;;  %v400_v9 = vadd.f32 %v399_v8, %v804_v53  ;;  %516 = vst [vmem:[#allocation5 + $0x78] sm:$0xff] %v469_v7  ;;  %v473_v11 = vadd.f32 %v472_v10, %v808_v56 }
 0x104   :  { %v401_v12 = vpop.f32.mrf.mxu0  ;;  %v474_v14 = vpop.f32.mrf.mxu1 }
 0x105   :  { %521 = vst [vmem:[#allocation5 + $0xa0] sm:$0xff] %v400_v9  ;;  %v402_v13 = vadd.f32 %v401_v12, %v812_v38  ;;  %523 = vst [vmem:[#allocation5 + $0xb0] sm:$0xff] %v473_v11  ;;  %v475_v15 = vadd.f32 %v474_v14, %v816_v60 }
 0x106   :  { %v403_v16 = vpop.f32.mrf.mxu0  ;;  %v476_v18 = vpop.f32.mrf.mxu1 }
 0x107   :  { %522 = vst [vmem:[#allocation5 + $0xa8] sm:$0xff] %v402_v13  ;;  %v404_v17 = vadd.f32 %v403_v16, %v804_v53  ;;  %524 = vst [vmem:[#allocation5 + $0xb8] sm:$0xff] %v475_v15  ;;  %v477_v19 = vadd.f32 %v476_v18, %v808_v56 }
 0x108   :  { %v405_v20 = vpop.f32.mrf.mxu0  ;;  %v478_v22 = vpop.f32.mrf.mxu1 }
 0x109   :  { %529 = vst [vmem:[#allocation5 + $0xe0] sm:$0xff] %v404_v17  ;;  %v406_v21 = vadd.f32 %v405_v20, %v812_v38  ;;  %531 = vst [vmem:[#allocation5 + $0xf0] sm:$0xff] %v477_v19  ;;  %v479_v23 = vadd.f32 %v478_v22, %v816_v60 }
 0x10a   :  { %v409_v24 = vpop.f32.mrf.mxu0  ;;  %v482_v26 = vpop.f32.mrf.mxu1 }
 0x10b   :  { %530 = vst [vmem:[#allocation5 + $0xe8] sm:$0xff] %v406_v21  ;;  %v410_v25 = vadd.f32 %v409_v24, %v804_v53  ;;  %532 = vst [vmem:[#allocation5 + $0xf8] sm:$0xff] %v479_v23  ;;  %v483_v27 = vadd.f32 %v482_v26, %v808_v56 }
 0x10c   :  { %v411_v28 = vpop.f32.mrf.mxu0  ;;  %v484_v30 = vpop.f32.mrf.mxu1 }
 0x10d   :  { %537 = vst [vmem:[#allocation5 + $0x120] sm:$0xff] %v410_v25  ;;  %v412_v29 = vadd.f32 %v411_v28, %v812_v38  ;;  %539 = vst [vmem:[#allocation5 + $0x130] sm:$0xff] %v483_v27  ;;  %v485_v31 = vadd.f32 %v484_v30, %v816_v60 }
 0x10e   :  { %v413_v32 = vpop.f32.mrf.mxu0  ;;  %v486_v34 = vpop.f32.mrf.mxu1 }
 0x10f   :  { %538 = vst [vmem:[#allocation5 + $0x128] sm:$0xff] %v412_v29  ;;  %v414_v33 = vadd.f32 %v413_v32, %v804_v53  ;;  %540 = vst [vmem:[#allocation5 + $0x138] sm:$0xff] %v485_v31  ;;  %v487_v35 = vadd.f32 %v486_v34, %v808_v56 }
 0x110   :  { %v415_v36 = vpop.f32.mrf.mxu0  ;;  %v488_v39 = vpop.f32.mrf.mxu1 }
 0x111   :  { %545 = vst [vmem:[#allocation5 + $0x160] sm:$0xff] %v414_v33  ;;  %v416_v37 = vadd.f32 %v415_v36, %v812_v38  ;;  %547 = vst [vmem:[#allocation5 + $0x170] sm:$0xff] %v487_v35  ;;  %v489_v41 = vadd.f32 %v488_v39, %v816_v60 }
 0x112   :  { %v419_v42 = vpop.f32.mrf.mxu0  ;;  %v492_v47 = vpop.f32.mrf.mxu1 }
 0x113   :  { %546 = vst [vmem:[#allocation5 + $0x168] sm:$0xff] %v416_v37  ;;  %v420_v43 = vadd.f32 %v419_v42, %v804_v53  ;;  %548 = vst [vmem:[#allocation5 + $0x178] sm:$0xff] %v489_v41  ;;  %v493_v49 = vadd.f32 %v492_v47, %v808_v56 }
 0x114   :  { %v421_v50 = vpop.f32.mrf.mxu0  ;;  %v494_v52 = vpop.f32.mrf.mxu1 }
 0x115   :  { %553 = vst [vmem:[#allocation5 + $0x1a0] sm:$0xff] %v420_v43  ;;  %v422_v51 = vadd.f32 %v421_v50, %v812_v38  ;;  %555 = vst [vmem:[#allocation5 + $0x1b0] sm:$0xff] %v493_v49  ;;  %v495_v54 = vadd.f32 %v494_v52, %v816_v60 }
 0x116   :  { %v423_v55 = vpop.f32.mrf.mxu0  ;;  %v496_v58 = vpop.f32.mrf.mxu1 }
 0x117   :  { %554 = vst [vmem:[#allocation5 + $0x1a8] sm:$0xff] %v422_v51  ;;  %v424_v57 = vadd.f32 %v423_v55, %v804_v53  ;;  %556 = vst [vmem:[#allocation5 + $0x1b8] sm:$0xff] %v495_v54  ;;  %v497_v44 = vadd.f32 %v496_v58, %v808_v56 }
 0x118   :  { %v425_v59 = vpop.f32.mrf.mxu0  ;;  %v498_v61 = vpop.f32.mrf.mxu1 }
 0x119   :  { %561 = vst [vmem:[#allocation5 + $0x1e0] sm:$0xff] %v424_v57  ;;  %v426_v45 = vadd.f32 %v425_v59, %v812_v38  ;;  %563 = vst [vmem:[#allocation5 + $0x1f0] sm:$0xff] %v497_v44  ;;  %v499_v62 = vadd.f32 %v498_v61, %v816_v60 }
 0x11b   :  { %562 = vst [vmem:[#allocation5 + $0x1e8] sm:$0xff] %v426_v45  ;;  %564 = vst [vmem:[#allocation5 + $0x1f8] sm:$0xff] %v499_v62 }
 0x11c   :  { %660 = shalt.err (!%p657_p9)
}
 0x11d   :  { %s678_s29 = smov 1024   ;;  %s679_s30 = smov 64  }
 0x11e   :  { %576 = dma.vmem_to_hbm [thread:$0]  %s571_s27, 8192, %s856_s3, [#allocation4], %s678_s29, %s678_s29, %s679_s30  }
 0x11f   :  { %671 = dma.done.wait [#allocation4], 8192  }
 0x120   :  { %672 = vsyncadd [#allocation4], 4294959104 }
 0x121   :  { %580 = vsyncpa [#allocation3], 1 }
 0x122   :  { %581 = vsyncpa [#allocation4], 1 }

</bundles_post_ra>
